<compile_context>
chip_gen: v7x
topology: tpu7x:2x2x1
jax: 0.10.0
libtpu: 0.0.40
codegen_flags: <defaults>
</compile_context>

<pallas_src>
import functools

import jax
import jax.numpy as jnp
from jax.experimental import pallas as pl
from jax.experimental.pallas import tpu as pltpu


# ---------------------------------------------------------------------------
# Fused Pallas kernel: all GraphConv layers + merged policy/value head
# Runs once per graph (grid axis over the batch, "parallel").
# ---------------------------------------------------------------------------
def _gcn_fused_kernel(*refs, n_conv):
    # refs = (a, h0, [w_i, b_i] * n_conv, w_heads, b_heads, out)
    a_ref, h_ref = refs[0], refs[1]
    layer_refs = refs[2:2 + 2 * n_conv]
    wh_ref, bh_ref = refs[2 + 2 * n_conv], refs[3 + 2 * n_conv]
    out_ref = refs[-1]

    a = a_ref[...]            # (N, N) f32 normalized adjacency
    h = h_ref[...]            # (N, F_in) f32; stays in VMEM/vregs across layers

    for i in range(n_conv):
        w = layer_refs[2 * i][...]
        b = layer_refs[2 * i + 1][...]            # (1, F_out)
        f_in, f_out = w.shape
        if f_in <= f_out:
            # (A @ H) @ W : input feature dim is the smaller one.
            ah = jnp.dot(a, h, preferred_element_type=jnp.float32)
            h = jnp.dot(ah, w, preferred_element_type=jnp.float32) + b
        else:
            # A @ (H @ W) : output feature dim is the smaller one.
            hw = jnp.dot(h, w, preferred_element_type=jnp.float32)
            h = jnp.dot(a, hw, preferred_element_type=jnp.float32) + b
        if i < n_conv - 1:                        # last GraphConv has no activation
            h = jnp.maximum(h, 0.0)               # ReLU (f32, v5e-safe)

    n = h.shape[0]

    # Merged heads: one (N, C) @ (C, 128) matmul whose output is already the
    # lane-dense slab.  Column 0 = h @ Wp, column 1 = h @ Wv, rest zero.
    hv = jnp.dot(h, wh_ref[...], preferred_element_type=jnp.float32) + bh_ref[...]

    # Value head: mean over nodes commutes with the linear head, so
    # V = mean_rows(hv)[1] = mean_nodes(h) @ Wv + bv.
    mean_row = jnp.sum(hv, axis=0, keepdims=True) * (1.0 / n)     # (1, 128)

    # Pack: PI stays in column 0, V goes to [0, 1]; full unmasked (N, 128) store.
    lane = jax.lax.broadcasted_iota(jnp.int32, (n, 128), 1)
    row = jax.lax.broadcasted_iota(jnp.int32, (n, 128), 0)
    slab = jnp.where(lane == 0, hv, 0.0)
    slab = jnp.where((lane == 1) & (row == 0), mean_row, slab)
    out_ref[...] = slab.astype(out_ref.dtype)


# ---------------------------------------------------------------------------
# Wrapper
# ---------------------------------------------------------------------------
def gcn_forward(a_hat, features, params):
    """a_hat: (B, N, N), features: (B, N, F_in) -> PI (B, N, 1), V (B, 1, 1)."""
    b_graphs, n, f_in = features.shape
    layers = params["layers"]
    n_conv = len(layers)
    n_classes = params["policy_w"].shape[0]

    # Merge the two heads into one lane-dense (C, 128) matrix + (1, 128) bias row.
    w_heads = jnp.zeros((n_classes, 128), jnp.float32)
    w_heads = w_heads.at[:, 0].set(params["policy_w"][:, 0])
    w_heads = w_heads.at[:, 1].set(params["value_w"][:, 0])
    b_heads = jnp.zeros((1, 128), jnp.float32)
    b_heads = b_heads.at[0, 0].set(params["policy_b"][0])
    b_heads = b_heads.at[0, 1].set(params["value_b"][0])

    inputs = [a_hat, features]
    in_specs = [
        pl.BlockSpec((None, n, n), lambda i: (i, 0, 0)),
        pl.BlockSpec((None, n, f_in), lambda i: (i, 0, 0)),
    ]
    for w, bias in layers:
        inputs += [w, bias.reshape(1, -1)]
        in_specs += [pl.BlockSpec(w.shape, lambda i: (0, 0)),
                     pl.BlockSpec((1, w.shape[1]), lambda i: (0, 0))]
    inputs += [w_heads, b_heads]
    in_specs += [pl.BlockSpec(w_heads.shape, lambda i: (0, 0)),
                 pl.BlockSpec(b_heads.shape, lambda i: (0, 0))]

    kernel = functools.partial(_gcn_fused_kernel, n_conv=n_conv)

    out = pl.pallas_call(
        kernel,
        grid=(b_graphs,),
        in_specs=in_specs,
        out_specs=pl.BlockSpec((None, n, 128), lambda i: (i, 0, 0)),
        out_shape=jax.ShapeDtypeStruct((b_graphs, n, 128), jnp.float32),
        compiler_params=pltpu.CompilerParams(
            dimension_semantics=("parallel",)),   # shards batch across v7x's 2 TCs
    )(*inputs)

    pi = out[:, :, 0:1]       # (B, N, 1)
    v = out[:, 0:1, 1:2]      # (B, 1, 1)
    return pi, v


# ---------------------------------------------------------------------------
# Pure-JAX reference (for correctness checking)
# ---------------------------------------------------------------------------
def gcn_reference(a_hat, features, params):
    def one(a, h):
        layers = params["layers"]
        for i, (w, b) in enumerate(layers):
            h = a @ (h @ w) + b
            if i < len(layers) - 1:
                h = jnp.maximum(h, 0.0)
        pi = h @ params["policy_w"] + params["policy_b"]
        v = jnp.mean(h, axis=0, keepdims=True) @ params["value_w"] + params["value_b"]
        return pi, v
    return jax.vmap(one)(a_hat, features)


# ---------------------------------------------------------------------------
# Parameter / graph construction (plain JAX, deterministic)
# ---------------------------------------------------------------------------
def init_params(key, in_feats, n_hidden, n_classes, n_layers):
    dims = [(in_feats, n_hidden)] + \
           [(n_hidden, n_hidden)] * (n_layers - 1) + \
           [(n_hidden, n_classes)]
    keys = jax.random.split(key, len(dims) + 2)
    layers = []
    for k, (fi, fo) in zip(keys[:len(dims)], dims):
        w = jax.random.normal(k, (fi, fo), jnp.float32) * (1.0 / jnp.sqrt(fi))
        b = jnp.zeros((fo,), jnp.float32)
        layers.append((w, b))
    kp, kv = keys[len(dims):]
    return {
        "layers": layers,
        "policy_w": jax.random.normal(kp, (n_classes, 1), jnp.float32) * 0.1,
        "policy_b": jnp.zeros((1,), jnp.float32),
        "value_w": jax.random.normal(kv, (n_classes, 1), jnp.float32) * 0.1,
        "value_b": jnp.zeros((1,), jnp.float32),
    }


def build_graph(key, n_nodes):
    # deterministic random undirected graph, no self-loops
    adj = (jax.random.uniform(key, (n_nodes, n_nodes)) < 0.35).astype(jnp.float32)
    adj = jnp.maximum(adj, adj.T) * (1.0 - jnp.eye(n_nodes, dtype=jnp.float32))
    deg = jnp.clip(adj.sum(axis=1), 1.0, None)      # DGL clamps degree to >= 1
    dinv = 1.0 / jnp.sqrt(deg)
    return dinv[:, None] * adj * dinv[None, :]      # D^{-1/2} A D^{-1/2}


if __name__ == "__main__":
    B = 4           # graphs per batched pallas_call
    N = 16          # nodes per graph
    IN_FEATS = 4
    N_HIDDEN = 32
    N_CLASSES = 8
    N_LAYERS = 2    # -> 3 GraphConv layers total (matches the torch module)

    key = jax.random.PRNGKey(0)
    k_graph, k_feat, k_par = jax.random.split(key, 3)

    graph_keys = jax.random.split(k_graph, B)
    a_hat = jax.vmap(lambda k: build_graph(k, N))(graph_keys)          # (B, N, N)
    features = jax.random.normal(k_feat, (B, N, IN_FEATS), jnp.float32)
    params = init_params(k_par, IN_FEATS, N_HIDDEN, N_CLASSES, N_LAYERS)

    fwd = jax.jit(gcn_forward)
    pi, v = fwd(a_hat, features, params)
    jax.block_until_ready((pi, v))

    assert pi.shape == (B, N, 1) and v.shape == (B, 1, 1)
    assert bool(jnp.isfinite(pi).all()) and bool(jnp.isfinite(v).all())

    pi_ref, v_ref = gcn_reference(a_hat, features, params)
    assert bool(jnp.allclose(pi, pi_ref, rtol=1e-4, atol=1e-4))
    assert bool(jnp.allclose(v, v_ref, rtol=1e-4, atol=1e-4))

    print("KERNEL_OK")
</pallas_src>

<mosaic_0001>
module attributes {stable_mosaic.version = 11 : i64} {
  func.func @_gcn_fused_kernel(%arg0: i32, %arg1: memref<1x16x16xf32, #tpu.memory_space<vmem>>, %arg2: memref<1x16x4xf32, #tpu.memory_space<vmem>>, %arg3: memref<4x32xf32, #tpu.memory_space<vmem>>, %arg4: memref<1x32xf32, #tpu.memory_space<vmem>>, %arg5: memref<32x32xf32, #tpu.memory_space<vmem>>, %arg6: memref<1x32xf32, #tpu.memory_space<vmem>>, %arg7: memref<32x8xf32, #tpu.memory_space<vmem>>, %arg8: memref<1x8xf32, #tpu.memory_space<vmem>>, %arg9: memref<8x128xf32, #tpu.memory_space<vmem>>, %arg10: memref<1x128xf32, #tpu.memory_space<vmem>>, %arg11: memref<1x16x128xf32, #tpu.memory_space<vmem>>) attributes {dimension_semantics = [#tpu.dimension_semantics<parallel>], iteration_bounds = array<i64: 4>, scalar_prefetch = 0 : i64, scratch_operands = 0 : i64, tpu.core_type = #tpu.core_type<tc>, window_params = [{transform_indices = @transform_0, window_bounds = array<i64: 1, 16, 16>}, {transform_indices = @transform_1, window_bounds = array<i64: 1, 16, 4>}, {pipeline_mode = #tpu.pipeline_mode<synchronous>, transform_indices = @transform_2, window_bounds = array<i64: 4, 32>}, {pipeline_mode = #tpu.pipeline_mode<synchronous>, transform_indices = @transform_3, window_bounds = array<i64: 1, 32>}, {pipeline_mode = #tpu.pipeline_mode<synchronous>, transform_indices = @transform_4, window_bounds = array<i64: 32, 32>}, {pipeline_mode = #tpu.pipeline_mode<synchronous>, transform_indices = @transform_5, window_bounds = array<i64: 1, 32>}, {pipeline_mode = #tpu.pipeline_mode<synchronous>, transform_indices = @transform_6, window_bounds = array<i64: 32, 8>}, {pipeline_mode = #tpu.pipeline_mode<synchronous>, transform_indices = @transform_7, window_bounds = array<i64: 1, 8>}, {pipeline_mode = #tpu.pipeline_mode<synchronous>, transform_indices = @transform_8, window_bounds = array<i64: 8, 128>}, {pipeline_mode = #tpu.pipeline_mode<synchronous>, transform_indices = @transform_9, window_bounds = array<i64: 1, 128>}, {transform_indices = @transform_10, window_bounds = array<i64: 1, 16, 128>}]} {
    %c0 = arith.constant 0 : index
    %c0_0 = arith.constant 0 : index
    %c0_1 = arith.constant 0 : index
    %0 = vector.load %arg1[%c0, %c0_0, %c0_1] : memref<1x16x16xf32, #tpu.memory_space<vmem>>, vector<1x16x16xf32>
    %1 = vector.shape_cast %0 : vector<1x16x16xf32> to vector<16x16xf32>
    %c0_2 = arith.constant 0 : index
    %c0_3 = arith.constant 0 : index
    %c0_4 = arith.constant 0 : index
    %2 = vector.load %arg2[%c0_2, %c0_3, %c0_4] : memref<1x16x4xf32, #tpu.memory_space<vmem>>, vector<1x16x4xf32>
    %3 = vector.shape_cast %2 : vector<1x16x4xf32> to vector<16x4xf32>
    %c0_5 = arith.constant 0 : index
    %c0_6 = arith.constant 0 : index
    %4 = vector.load %arg3[%c0_5, %c0_6] : memref<4x32xf32, #tpu.memory_space<vmem>>, vector<4x32xf32>
    %c0_7 = arith.constant 0 : index
    %c0_8 = arith.constant 0 : index
    %5 = vector.load %arg4[%c0_7, %c0_8] : memref<1x32xf32, #tpu.memory_space<vmem>>, vector<1x32xf32>
    %cst = arith.constant dense<0.000000e+00> : vector<16x4xf32>
    %6 = tpu.matmul %1, %3, %cst {dimension_numbers = #tpu.dot_dimension_numbers<[1], [0], [0], [1], [0, 0, 1, 1], [], []>} : vector<16x16xf32>, vector<16x4xf32>, vector<16x4xf32> -> vector<16x4xf32>
    %cst_9 = arith.constant dense<0.000000e+00> : vector<16x32xf32>
    %7 = tpu.matmul %6, %4, %cst_9 {dimension_numbers = #tpu.dot_dimension_numbers<[1], [0], [0], [1], [0, 0, 1, 1], [], []>} : vector<16x4xf32>, vector<4x32xf32>, vector<16x32xf32> -> vector<16x32xf32>
    %8 = vector.broadcast %5 : vector<1x32xf32> to vector<16x32xf32>
    %9 = arith.addf %7, %8 : vector<16x32xf32>
    %cst_10 = arith.constant 0.000000e+00 : f32
    %10 = vector.broadcast %cst_10 : f32 to vector<16x32xf32>
    %11 = arith.maximumf %9, %10 : vector<16x32xf32>
    %c0_11 = arith.constant 0 : index
    %c0_12 = arith.constant 0 : index
    %12 = vector.load %arg5[%c0_11, %c0_12] : memref<32x32xf32, #tpu.memory_space<vmem>>, vector<32x32xf32>
    %c0_13 = arith.constant 0 : index
    %c0_14 = arith.constant 0 : index
    %13 = vector.load %arg6[%c0_13, %c0_14] : memref<1x32xf32, #tpu.memory_space<vmem>>, vector<1x32xf32>
    %cst_15 = arith.constant dense<0.000000e+00> : vector<16x32xf32>
    %14 = tpu.matmul %1, %11, %cst_15 {dimension_numbers = #tpu.dot_dimension_numbers<[1], [0], [0], [1], [0, 0, 1, 1], [], []>} : vector<16x16xf32>, vector<16x32xf32>, vector<16x32xf32> -> vector<16x32xf32>
    %cst_16 = arith.constant dense<0.000000e+00> : vector<16x32xf32>
    %15 = tpu.matmul %14, %12, %cst_16 {dimension_numbers = #tpu.dot_dimension_numbers<[1], [0], [0], [1], [0, 0, 1, 1], [], []>} : vector<16x32xf32>, vector<32x32xf32>, vector<16x32xf32> -> vector<16x32xf32>
    %16 = vector.broadcast %13 : vector<1x32xf32> to vector<16x32xf32>
    %17 = arith.addf %15, %16 : vector<16x32xf32>
    %cst_17 = arith.constant 0.000000e+00 : f32
    %18 = vector.broadcast %cst_17 : f32 to vector<16x32xf32>
    %19 = arith.maximumf %17, %18 : vector<16x32xf32>
    %c0_18 = arith.constant 0 : index
    %c0_19 = arith.constant 0 : index
    %20 = vector.load %arg7[%c0_18, %c0_19] : memref<32x8xf32, #tpu.memory_space<vmem>>, vector<32x8xf32>
    %c0_20 = arith.constant 0 : index
    %c0_21 = arith.constant 0 : index
    %21 = vector.load %arg8[%c0_20, %c0_21] : memref<1x8xf32, #tpu.memory_space<vmem>>, vector<1x8xf32>
    %cst_22 = arith.constant dense<0.000000e+00> : vector<16x8xf32>
    %22 = tpu.matmul %19, %20, %cst_22 {dimension_numbers = #tpu.dot_dimension_numbers<[1], [0], [0], [1], [0, 0, 1, 1], [], []>} : vector<16x32xf32>, vector<32x8xf32>, vector<16x8xf32> -> vector<16x8xf32>
    %cst_23 = arith.constant dense<0.000000e+00> : vector<16x8xf32>
    %23 = tpu.matmul %1, %22, %cst_23 {dimension_numbers = #tpu.dot_dimension_numbers<[1], [0], [0], [1], [0, 0, 1, 1], [], []>} : vector<16x16xf32>, vector<16x8xf32>, vector<16x8xf32> -> vector<16x8xf32>
    %24 = vector.broadcast %21 : vector<1x8xf32> to vector<16x8xf32>
    %25 = arith.addf %23, %24 : vector<16x8xf32>
    %c0_24 = arith.constant 0 : index
    %c0_25 = arith.constant 0 : index
    %26 = vector.load %arg9[%c0_24, %c0_25] : memref<8x128xf32, #tpu.memory_space<vmem>>, vector<8x128xf32>
    %cst_26 = arith.constant dense<0.000000e+00> : vector<16x128xf32>
    %27 = tpu.matmul %25, %26, %cst_26 {dimension_numbers = #tpu.dot_dimension_numbers<[1], [0], [0], [1], [0, 0, 1, 1], [], []>} : vector<16x8xf32>, vector<8x128xf32>, vector<16x128xf32> -> vector<16x128xf32>
    %c0_27 = arith.constant 0 : index
    %c0_28 = arith.constant 0 : index
    %28 = vector.load %arg10[%c0_27, %c0_28] : memref<1x128xf32, #tpu.memory_space<vmem>>, vector<1x128xf32>
    %29 = vector.broadcast %28 : vector<1x128xf32> to vector<16x128xf32>
    %30 = arith.addf %27, %29 : vector<16x128xf32>
    %cst_29 = arith.constant dense<0.000000e+00> : vector<128xf32>
    %31 = vector.multi_reduction <add>, %30, %cst_29 [0] : vector<16x128xf32> to vector<128xf32>
    %32 = vector.shape_cast %31 : vector<128xf32> to vector<1x128xf32>
    %cst_30 = arith.constant 6.250000e-02 : f32
    %33 = vector.broadcast %cst_30 : f32 to vector<1x128xf32>
    %34 = arith.mulf %32, %33 : vector<1x128xf32>
    %35 = tpu.iota {dimensions = array<i32: 1>} : vector<16x128xi32>
    %36 = tpu.iota {dimensions = array<i32: 0>} : vector<16x128xi32>
    %c0_i32 = arith.constant 0 : i32
    %37 = vector.broadcast %c0_i32 : i32 to vector<16x128xi32>
    %38 = arith.cmpi eq, %35, %37 : vector<16x128xi32>
    %cst_31 = arith.constant 0.000000e+00 : f32
    %39 = vector.broadcast %cst_31 : f32 to vector<16x128xf32>
    %40 = arith.select %38, %30, %39 : vector<16x128xi1>, vector<16x128xf32>
    %c1_i32 = arith.constant 1 : i32
    %41 = vector.broadcast %c1_i32 : i32 to vector<16x128xi32>
    %42 = arith.cmpi eq, %35, %41 : vector<16x128xi32>
    %c0_i32_32 = arith.constant 0 : i32
    %43 = vector.broadcast %c0_i32_32 : i32 to vector<16x128xi32>
    %44 = arith.cmpi eq, %36, %43 : vector<16x128xi32>
    %45 = arith.andi %42, %44 : vector<16x128xi1>
    %46 = vector.shape_cast %34 : vector<1x128xf32> to vector<1x128xf32>
    %47 = vector.broadcast %46 : vector<1x128xf32> to vector<16x128xf32>
    %48 = arith.select %45, %47, %40 : vector<16x128xi1>, vector<16x128xf32>
    %c0_33 = arith.constant 0 : index
    %c0_34 = arith.constant 0 : index
    %c0_35 = arith.constant 0 : index
    %49 = vector.load %arg11[%c0_33, %c0_34, %c0_35] : memref<1x16x128xf32, #tpu.memory_space<vmem>>, vector<1x16x128xf32>
    %50 = vector.shape_cast %49 : vector<1x16x128xf32> to vector<16x128xf32>
    %51 = vector.shape_cast %48 : vector<16x128xf32> to vector<1x16x128xf32>
    tpu.vector_store %arg11[%c0_33, %c0_34, %c0_35], %51 {strides = array<i32>} : memref<1x16x128xf32, #tpu.memory_space<vmem>>, vector<1x16x128xf32>,
    return
  }
  func.func @transform_0(%arg0: i32) -> (i32, i32, i32) {
    %c0_i32 = arith.constant 0 : i32
    %c0_i32_0 = arith.constant 0 : i32
    %c0_i32_1 = arith.constant 0 : i32
    return %arg0, %c0_i32, %c0_i32_0 : i32, i32, i32
  }
  func.func @transform_1(%arg0: i32) -> (i32, i32, i32) {
    %c0_i32 = arith.constant 0 : i32
    %c0_i32_0 = arith.constant 0 : i32
    %c0_i32_1 = arith.constant 0 : i32
    return %arg0, %c0_i32, %c0_i32_0 : i32, i32, i32
  }
  func.func @transform_2(%arg0: i32) -> (i32, i32) {
    %c0_i32 = arith.constant 0 : i32
    %c0_i32_0 = arith.constant 0 : i32
    %c0_i32_1 = arith.constant 0 : i32
    return %c0_i32, %c0_i32_0 : i32, i32
  }
  func.func @transform_3(%arg0: i32) -> (i32, i32) {
    %c0_i32 = arith.constant 0 : i32
    %c0_i32_0 = arith.constant 0 : i32
    %c0_i32_1 = arith.constant 0 : i32
    return %c0_i32, %c0_i32_0 : i32, i32
  }
  func.func @transform_4(%arg0: i32) -> (i32, i32) {
    %c0_i32 = arith.constant 0 : i32
    %c0_i32_0 = arith.constant 0 : i32
    %c0_i32_1 = arith.constant 0 : i32
    return %c0_i32, %c0_i32_0 : i32, i32
  }
  func.func @transform_5(%arg0: i32) -> (i32, i32) {
    %c0_i32 = arith.constant 0 : i32
    %c0_i32_0 = arith.constant 0 : i32
    %c0_i32_1 = arith.constant 0 : i32
    return %c0_i32, %c0_i32_0 : i32, i32
  }
  func.func @transform_6(%arg0: i32) -> (i32, i32) {
    %c0_i32 = arith.constant 0 : i32
    %c0_i32_0 = arith.constant 0 : i32
    %c0_i32_1 = arith.constant 0 : i32
    return %c0_i32, %c0_i32_0 : i32, i32
  }
  func.func @transform_7(%arg0: i32) -> (i32, i32) {
    %c0_i32 = arith.constant 0 : i32
    %c0_i32_0 = arith.constant 0 : i32
    %c0_i32_1 = arith.constant 0 : i32
    return %c0_i32, %c0_i32_0 : i32, i32
  }
  func.func @transform_8(%arg0: i32) -> (i32, i32) {
    %c0_i32 = arith.constant 0 : i32
    %c0_i32_0 = arith.constant 0 : i32
    %c0_i32_1 = arith.constant 0 : i32
    return %c0_i32, %c0_i32_0 : i32, i32
  }
  func.func @transform_9(%arg0: i32) -> (i32, i32) {
    %c0_i32 = arith.constant 0 : i32
    %c0_i32_0 = arith.constant 0 : i32
    %c0_i32_1 = arith.constant 0 : i32
    return %c0_i32, %c0_i32_0 : i32, i32
  }
  func.func @transform_10(%arg0: i32) -> (i32, i32, i32) {
    %c0_i32 = arith.constant 0 : i32
    %c0_i32_0 = arith.constant 0 : i32
    %c0_i32_1 = arith.constant 0 : i32
    return %arg0, %c0_i32, %c0_i32_0 : i32, i32, i32
  }
}

</mosaic_0001>

<bundles_post_ra>
// kernel: gcn_forward.1
= control target key start
LH: loop header
LB: loop body
LE: loop exit
PB: predicated region body
PF: predicated region fallthrough
CT: control target
= control target key end

     0   :  { %s1298_s13 = smov 0   ;;  %s1382_s0 = inlined_call_operand.vmem [shape: f32[4,16,16], index: 0, kind: input, shape index: {}]   ;;  %s1383_s1 = inlined_call_operand.vmem [shape: f32[4,16,4], index: 1, kind: input, shape index: {}]   ;;  %s1384_s2 = inlined_call_operand.vmem [shape: f32[4,32], index: 2, kind: input, shape index: {}]   ;;  %s1385_s3 = inlined_call_operand.vmem [shape: f32[1,32], index: 3, kind: input, shape index: {}]   ;;  %s1386_s4 = inlined_call_operand.vmem [shape: f32[32,32], index: 4, kind: input, shape index: {}]   ;;  %s1387_s5 = inlined_call_operand.vmem [shape: f32[1,32], index: 5, kind: input, shape index: {}]   ;;  %s1388_s6 = inlined_call_operand.vmem [shape: f32[32,8], index: 6, kind: input, shape index: {}]   ;;  %s1389_s7 = inlined_call_operand.vmem [shape: f32[1,8], index: 7, kind: input, shape index: {}]   ;;  %s1390_s8 = inlined_call_operand.vmem [shape: f32[8,128], index: 8, kind: input, shape index: {}]   ;;  %s1391_s9 = inlined_call_operand.vmem [shape: f32[1,128], index: 9, kind: input, shape index: {}]   ;;  %s1392_s10 = inlined_call_operand.vmem [shape: f32[4,16,128], index: 10, kind: output, shape index: {}]  }
   0x1 LB: > { %s1081_s14 = sadd.s32 4294967295, %s1241_s13   ;;  %p1085_p0 = scmp.ge.s32.totalorder %s1241_s13, 1  ;;  %s1241_s13 = sphi %s1298_s13, %s20_s13  }
   0x2   : > { %p322_p1 = scmp.lt.s32.totalorder %s1241_s13, 5 }
   0x4   : > { %p323_p2 = pnand %p1085_p0, %p322_p1 }
   0x5   : > { %p365_p3 = scmp.lt.s32.totalorder (!%p323_p2), %s1081_s14, 3  ;;  %vm386_vm0 = vcmask (!%p323_p2), 130048   ;;  %v384_v5 = vld [vmem:[%s1384_s2] sm:$0xf] (!%p323_p2)  ;;  %vm481_vm1 = vcmask (!%p323_p2), 1043456   ;;  %vm474_vm2 = vcmask (!%p323_p2), 31744   ;;  %v997_v46 = vlaneseq (!%p323_p2) }
   0x6   : > { %326 = sbr.rel (%p323_p2) target bundleno = 1560 (0x618), region = 60  ;;  %1153 = vmatprep.subr.msk.mxu1 (!%p323_p2), %vm481_vm1, %v384_v5  ;;  %v562_v8 = vld [vmem:[%s1386_s4] sm:$0xff] (!%p323_p2)  ;;  %v563_v9 = vld [vmem:[%s1386_s4 + $0x8] sm:$0xff] (!%p323_p2)  ;;  %v564_v10 = vld [vmem:[%s1386_s4 + $0x10] sm:$0xff] (!%p323_p2)  ;;  %vm648_vm3 = vcmask (!%p323_p2), 261120   ;;  %vm907_vm4 = vcmask (!%p323_p2), 64512  }
   0x7   : > { %1154 = vmatpush3.msk.msra.mxu1 (!%p323_p2), %vm481_vm1, %v384_v5  ;;  %v1207_v11 = vpack.c.bf16 (!%p323_p2), %v563_v9, %v562_v8  ;;  %v565_v12 = vld [vmem:[%s1386_s4 + $0x18] sm:$0xff] (!%p323_p2)  ;;  %v1094_v14 = vld [vmem:[%s1385_s3] ss:$0 sm:$0xff] (!%p323_p2)  ;;  %v733_v23 = vld [vmem:[%s1388_s6 + $0x8] sm:$0xff] (!%p323_p2)  ;;  %v998_v47 = vand.u32 (!%p323_p2), 127, %v997_v46  ;;  %v1000_v58 = vshrl.u32 (!%p323_p2), %v997_v46, 7 }
   0x8   : > { %v1211_v13 = vpack.c.bf16 (!%p323_p2), %v565_v12, %v564_v10  ;;  %v732_v22 = vld [vmem:[%s1388_s6] sm:$0xff] (!%p323_p2)  ;;  %v734_v27 = vld [vmem:[%s1388_s6 + $0x10] sm:$0xff] (!%p323_p2)  ;;  %v735_v28 = vld [vmem:[%s1388_s6 + $0x18] sm:$0xff] (!%p323_p2) }
   0x9   : > { %v1215_v24 = vpack.c.bf16 (!%p323_p2), %v733_v23, %v732_v22  ;;  %v1219_v29 = vpack.c.bf16 (!%p323_p2), %v735_v28, %v734_v27  ;;  %v1100_v30 = vld [vmem:[%s1387_s5] ss:$0 sm:$0xff] (!%p323_p2)  ;;  %vm1002_vm5 = vcmp.eq.s32.totalorder (!%p323_p2), %v998_v47, 0  ;;  %vm1005_vm6 = vcmp.eq.s32.totalorder (!%p323_p2), %v998_v47, 1 }
   0xa   : > { %v899_v40 = vld [vmem:[%s1390_s8] sm:$0xff] (!%p323_p2)  ;;  %vm1006_vm7 = vcmp.eq.s32.totalorder (!%p323_p2), %v1000_v58, 0 }
   0xb   : > { %v1105_v41 = vld [vmem:[%s1389_s7] ss:$0 sm:$0xff] (!%p323_p2)  ;;  %vm1008_vm8 = vmand (!%p323_p2), %vm1005_vm6, %vm1006_vm7 }
   0xc   : > { %v1108_v48 = vld [vmem:[%s1391_s9] ss:$0 sm:$0xff] (!%p323_p2) }
   0xd   : > { %s1394_s14 = smov (!%p365_p3, %s1081_s14), 3 }
   0xe   : > { %s1306_s15 = sshll.u32 %s1394_s14, 4 }
   0xf   : > { %s374_s18 = scalar_lea.vmem %s1383_s1, %s1306_s15  ;;  %s369_s21 = scalar_lea.vmem %s1382_s0, %s1306_s15 }
  0x10   : > { %v382_v0 = vld [vmem:[%s374_s18] sm:$0xff]  ;;  %v383_v1 = vld [vmem:[%s374_s18 + $0x8] sm:$0xff]  ;;  %s379_s16 = scalar_lea.vmem %s1392_s10, %s1306_s15 }
  0x11   : > { %v380_v2 = vld [vmem:[%s369_s21] sm:$0xff]  ;;  %v1199_v3 = vpack.c.bf16 %v383_v1, %v382_v0  ;;  %v1317_v4 = vld [vmem:[%s369_s21 + $0x8] sm:$0xff] }
  0x12   : > { %1150 = vmatprep.mubr.msk.f32.mxu0 %vm386_vm0, %v380_v2 }
  0x13   : > { %1200 = vmatprep.subr.bf16.mxu0 %v1199_v3 }
  0x14   : > { %1202 = vmatpush3.bf16.msra.mxu0 %v1199_v3 }
  0x15   : > { %1208 = vmatprep.subr.bf16.mxu0 %v1207_v11 }
  0x17   : > { %1151 = vmatmul.mubr.msk.f32.vlgmr.msra.gmra.mrb[0].mxu0 %vm386_vm0, %v1317_v4 }
  0x18   : > { %1210 = vmatpush3.bf16.msra.mxu0 %v1207_v11 }
  0x19   : > { %1212 = vmatprep.subr.bf16.mxu0 %v1211_v13 }
  0x1c   : > { %1214 = vmatpush3.bf16.msra.mxu0 %v1211_v13 }
  0xea   : > { %v1152_v6 = vpop.f32.mrb[0].mxu0 }
  0xeb   : > { %v459_v7 = vpop.f32.mrb[1].mxu0 }
  0xec   : > { %1155 = vmatprep.mubr.msk.f32.mxu1 %vm474_vm2, %v459_v7 }
  0xed   : > { %1156 = vmatmul.mubr.msk.f32.vlgmr.msra.gmra.mrb[0].mxu1 %vm474_vm2, %v1152_v6 }
  0xee   : > { %1162 = vmatprep.mubr.msk.f32.mxu1 %vm386_vm0, %v380_v2 }
 0x1c0   : > { %v1157_v15 = vpop.f32.mrb[0].mxu1 }
 0x1c1   : > { %v557_v16 = vadd.f32 %v1157_v15, %v1094_v14  ;;  %v551_v17 = vpop.f32.mrb[1].mxu1 }
 0x1c2   : > { %v552_v18 = vadd.f32 %v1094_v14, %v551_v17 }
 0x1c3   : > { %v561_v19 = vmax.f32 %v557_v16, 0.0 }
 0x1c4   : > { %v560_v20 = vmax.f32 %v552_v18, 0.0 }
 0x1c6   : > { %v1203_v21 = vpack.c.bf16 %v561_v19, %v560_v20 }
 0x1c8   : > { %1204 = vmatprep.subr.bf16.mxu1 %v1203_v21 }
 0x1c9   : > { %1206 = vmatpush3.bf16.msra.mxu1 %v1203_v21 }
 0x1ca   : > { %1216 = vmatprep.subr.bf16.mxu1 %v1215_v24 }
 0x1cc   : > { %1163 = vmatmul.mubr.msk.f32.vlgmr.msra.gmra.mrb[2].mxu1 %vm386_vm0, %v1317_v4 }
 0x1cd   : > { %1218 = vmatpush3.bf16.msra.mxu1 %v1215_v24 }
 0x1ce   : > { %1220 = vmatprep.subr.bf16.mxu1 %v1219_v29 }
 0x1d1   : > { %1222 = vmatpush3.bf16.msra.mxu1 %v1219_v29 }
 0x1d2   : > { %1194 = vmatprep.subr.mxu1 %v899_v40 }
 0x29f   : > { %v1164_v25 = vpop.f32.mrb[2].mxu1 }
 0x2a0   : > { %v633_v26 = vpop.f32.mrb[3].mxu1 }
 0x2a1   : > { %1173 = vmatprep.mubr.msk.f32.mxu0 %vm648_vm3, %v633_v26 }
 0x2a2   : > { %1174 = vmatmul.mubr.msk.f32.vlgmr.msra.gmra.mrb[2].mxu0 %vm648_vm3, %v1164_v25 }
 0x2a3   : > { %1191 = vmatprep.mubr.msk.f32.mxu0 %vm386_vm0, %v380_v2 }
 0x375   : > { %v1175_v31 = vpop.f32.mrb[2].mxu0 }
 0x376   : > { %v727_v32 = vadd.f32 %v1175_v31, %v1100_v30  ;;  %v721_v33 = vpop.f32.mrb[3].mxu0 }
 0x377   : > { %v722_v34 = vadd.f32 %v1100_v30, %v721_v33 }
 0x378   : > { %v731_v36 = vmax.f32 %v727_v32, 0.0 }
 0x379   : > { %v730_v35 = vmax.f32 %v722_v34, 0.0 }
 0x37b   : > { %1184 = vmatprep.mubr.msk.f32.mxu1 %vm648_vm3, %v730_v35 }
 0x37c   : > { %1185 = vmatmul.mubr.msk.f32.vlgmr.msra.gmra.mrb[4].mxu1 %vm648_vm3, %v731_v36 }
 0x37d   : > { %1195 = vmatpush3.msra.mxu1 %v899_v40 }
 0x44f   : > { %v1186_v37 = vpop.f32.mrb[4].mxu1 }
 0x450   : > { %v809_v38 = vpop.f32.mrb[5].mxu1 }
 0x451   : > { %v1223_v39 = vpack.c.bf16 %v1186_v37, %v809_v38 }
 0x453   : > { %1224 = vmatprep.subr.bf16.mxu0 %v1223_v39 }
 0x454   : > { %1226 = vmatpush3.bf16.msra.mxu0 %v1223_v39 }
 0x457   : > { %1192 = vmatmul.mubr.msk.f32.vlgmr.msra.gmra.mrb[4].mxu0 %vm386_vm0, %v1317_v4 }
 0x52a   : > { %v1193_v42 = vpop.f32.mrb[4].mxu0 }
 0x52b   : > { %v890_v43 = vpop.f32.mrb[5].mxu0  ;;  %v896_v45 = vadd.f32 %v1193_v42, %v1105_v41 }
 0x52c   : > { %v891_v44 = vadd.f32 %v1105_v41, %v890_v43 }
 0x52e   : > { %1196 = vmatprep.mubr.msk.f32.mxu1 %vm907_vm4, %v891_v44 }
 0x52f   : > { %1197 = vmatmul.mubr.msk.f32.vlgmr.msra.gmra.mrb[6].mxu1 %vm907_vm4, %v896_v45 }
 0x602   : > { %v1198_v49 = vpop.f32.mrb[6].mxu1 }
 0x603   : > { %v986_v50 = vadd.f32 %v1198_v49, %v1108_v48  ;;  %v980_v51 = vpop.f32.mrb[7].mxu1 }
 0x604   : > { %v981_v52 = vadd.f32 %v1108_v48, %v980_v51 }
 0x605   : > { %v1004_v53 = vsel %vm1002_vm5, %v986_v50, 0.0 }
 0x606   : > { %1013 = vst [vmem:[%s379_s16 + $0x8] sm:$0xff] %v1004_v53  ;;  %v989_v54 = vadd.f32 %v986_v50, %v981_v52  ;;  %v1003_v63 = vsel %vm1002_vm5, %v981_v52, 0.0 }
 0x608   : > { %v990_v55 = vrot.slane %v989_v54, 4 }
 0x60a   : > { %v991_v56 = vadd.f32 %v990_v55, %v989_v54 }
 0x60c   : > { %v992_v57 = vrot.slane %v991_v56, 2 }
 0x60e   : > { %v993_v59 = vadd.f32 %v992_v57, %v991_v56 }
 0x610   : > { %v994_v60 = vrot.slane %v993_v59, 1 }
 0x612   : > { %v995_v61 = vadd.f32 %v994_v60, %v993_v59 }
 0x614   : > { %v996_v62 = vmul.f32 0.0625, %v995_v61 }
 0x616   : > { %v1010_v0 = vsel %vm1008_vm8, %v996_v62, %v1003_v63 }
 0x617   : > { %1012 = vst [vmem:[%s379_s16] sm:$0xff] %v1010_v0 }
 0x618 PF: > { %s20_s13 = sadd.s32 1, %s1241_s13  }
 0x619   : > { %p17_p4 = scmp.ge.s32.totalorder %s20_s13, 6  }
 0x61b   :  { %19 = sbr.rel (!%p17_p4) target bundleno = 1 (0x1), region = 93 }

</bundles_post_ra>
